<compile_context>
chip_gen: v6e
topology: v6e:2x2x1
jax: 0.10.0
libtpu: 0.0.40
codegen_flags: <defaults>
</compile_context>

<pallas_src>
import numpy as np
from functools import partial

import jax
import jax.numpy as jnp
from jax.experimental import pallas as pl
from jax.experimental.pallas import tpu as pltpu

# ---- model hyper-parameters (mirrors params_local / __init__ args) -------------
MAXLEN = 16
WIDTH = 8                                   # width of the 2-D input
KERNELS = ((4, WIDTH), (6, WIDTH))          # kernels_tuple (kh, kw) with kw == WIDTH
FILTERS = (16, 16)                          # filters_list
TERMS_CLASSES = 32
FC_DEPTH = 1                                # params_local['FC_depth']
BATCH = 2
params_local = {"MAXLEN": MAXLEN, "FC_depth": FC_DEPTH}


def _next_pow2(n):
    return 1 if n <= 1 else 1 << (n - 1).bit_length()


def _round_up(n, m):
    return ((n + m - 1) // m) * m


_T = tuple(MAXLEN - kh + 1 for kh, _ in KERNELS)        # valid conv output lengths
_T_PAD = tuple(_next_pow2(t) for t in _T)                # padded (power of two) for tree pool
_BRANCH_W = tuple(tp * f for tp, f in zip(_T_PAD, FILTERS))
N_CONV = sum(_BRANCH_W)                                  # 16*16 + 16*16 = 512 columns


# ---------------------------- Pallas kernel ------------------------------------
def _tree_max_pool(slab, f):
    """slab: (TB, t_pad*f), column layout t*f + fil, t_pad power of two.
    Repeated lane-aligned halving maxima -> (TB, f) max over the time axis."""
    cur = slab
    while cur.shape[1] > f:
        half = cur.shape[1] // 2
        cur = jnp.maximum(cur[:, :half], cur[:, half:])
    return cur


def _model1_kernel(x_ref, wconv_ref, wf0_ref, wf1_ref, b_ref, o_ref):
    # In-kernel cast of x to the conv-weight dtype (bf16 fast path / f32 exact path);
    # HBM stays in the caller's dtype so there is no extra wrapper cast pass.
    x = x_ref[...].astype(wconv_ref.dtype)
    # Both conv branches as ONE (TB,128) x (128,512) MXU matmul (f32 accumulate).
    conv = jnp.dot(x, wconv_ref[...], preferred_element_type=jnp.float32)
    n0 = _BRANCH_W[0]
    pooled0 = _tree_max_pool(conv[:, :n0], FILTERS[0])          # (TB, F0)
    pooled1 = _tree_max_pool(conv[:, n0:], FILTERS[1])          # (TB, F1)
    # Fused FC chain + output layer (+ conv biases folded into b_ref) split at the
    # branch boundary -> two small f32 dots summed, no lane concatenation.
    net = (jnp.dot(pooled0, wf0_ref[...], preferred_element_type=jnp.float32)
           + jnp.dot(pooled1, wf1_ref[...], preferred_element_type=jnp.float32)
           + b_ref[...])
    # TODO(synk): optional lane-dense repack of the (TB,32) output into (TB/4,128)
    # rows (sublane->lane interleave on the XLU) skipped — output is ~20% of traffic.
    o_ref[...] = jax.nn.sigmoid(net).astype(o_ref.dtype)        # (TB, C)


# ------------------------------ wrapper glue -------------------------------------
def _unfold_conv_weight(w, kh, t_pad):
    """w: (kh*WIDTH, F) flattened conv kernel -> unfolded Toeplitz weight
    (MAXLEN*WIDTH, t_pad*F), columns T-major / F-minor.  Columns with t >= T
    duplicate the shift-0 column (harmless for the subsequent max-pool)."""
    K, F = w.shape
    T = MAXLEN - kh + 1
    wb = jnp.zeros((MAXLEN * WIDTH, t_pad, F), dtype=w.dtype)
    for t in range(t_pad):
        ts = t if t < T else 0
        wb = wb.at[ts * WIDTH: ts * WIDTH + K, t, :].set(w)
    return wb.reshape(MAXLEN * WIDTH, t_pad * F)


def _fuse_linear_chain(layers):
    """layers: [(W, b), ...] with no nonlinearity between them -> single (W, b)."""
    W_eff, b_eff = layers[0]
    for W, b in layers[1:]:
        b_eff = b_eff @ W + b
        W_eff = W_eff @ W
    return W_eff, b_eff


def _resident_spec(shape):
    """Constant operand (index_map -> (0,0)), never re-fetched across grid steps:
    single-buffer it when this JAX version supports pipeline_mode=Buffered(1)."""
    buffered = getattr(pl, "Buffered", None)
    if buffered is not None:
        try:
            return pl.BlockSpec(shape, lambda i: (0, 0), pipeline_mode=buffered(1))
        except TypeError:
            pass
    return pl.BlockSpec(shape, lambda i: (0, 0))


def _choose_tb(b_pad, batch_tile):
    """Pick the batch tile: as big as allowed, sublane-aligned, but split into >=2
    grid steps when there is enough work so both v7x TensorCores participate."""
    tb = _round_up(max(8, min(batch_tile, b_pad)), 8)
    if b_pad >= 16 and pl.cdiv(b_pad, tb) < 2:
        tb = _round_up(pl.cdiv(b_pad, 2), 8)
    return tb


@partial(jax.jit, static_argnames=("conv_bf16", "batch_tile"))
def model1_forward(x, params, *, conv_bf16=True, batch_tile=2048):
    B = x.shape[0]
    C = TERMS_CLASSES
    F0, F1 = FILTERS

    # ---- one-time parameter packing (negligible, wrapper side) ----
    (w0, b0), (w1, b1) = params["convs_kernel"]          # w_i: (kh_i*W, F_i), b_i: (1, F_i)
    W_unf = jnp.concatenate(
        [_unfold_conv_weight(w0, KERNELS[0][0], _T_PAD[0]),
         _unfold_conv_weight(w1, KERNELS[1][0], _T_PAD[1])], axis=1)      # (128, 512)
    # Fuse every FC layer + output layer (no activation between them in Model1).
    W_eff, b_eff = _fuse_linear_chain(list(params["fc_layers"]) + [params["out"]])
    Wf0, Wf1 = W_eff[:F0], W_eff[F0:F0 + F1]                              # (F0,C), (F1,C)
    # Conv bias is constant over the pooled axis -> fold it through the linear chain.
    b_total = b_eff + b0 @ Wf0 + b1 @ Wf1                                 # (1, C)

    # ---- lane-dense input: one sample row == MAXLEN*WIDTH == 128 floats ----
    x2d = x.reshape(B, MAXLEN * WIDTH)
    # Pad only to a sublane multiple (cheap, only for odd B); no full pad to TB —
    # the partial last grid block is handled by Pallas, and any NaN/garbage it
    # produces lives only in rows discarded by out[:B].
    B_pad = _round_up(B, 8)
    if B_pad != B:
        x2d = jnp.pad(x2d, ((0, B_pad - B), (0, 0)))

    # Cap the tile for v7x (64 MiB VMEM/TC); the f32 (TB,512) conv slab is TB*2 KiB.
    batch_tile = min(batch_tile, 4096)
    TB = _choose_tb(B_pad, batch_tile)
    grid = (pl.cdiv(B_pad, TB),)

    # bf16 conv operands (f32 accumulate): ship the tiny Toeplitz weight as bf16,
    # cast x in-kernel.  conv_bf16=False keeps exact f32 MXU semantics.
    conv_dtype = jnp.bfloat16 if conv_bf16 else x2d.dtype
    W_unf = W_unf.astype(conv_dtype)

    # Explicit scoped-VMEM budget so big tiles compile on v5e (16 MiB default) and
    # stay within v7x's smaller physical VMEM.
    isz_x = jnp.dtype(x2d.dtype).itemsize
    isz_w = jnp.dtype(conv_dtype).itemsize
    vmem_bytes = (TB * 128 * isz_x * 2            # x tile (double-buffered)
                  + 128 * N_CONV * isz_w * 2      # conv weight (+ margin)
                  + TB * N_CONV * 4               # f32 conv slab + pool temps
                  + TB * C * 4 * 2                # output tile (double-buffered)
                  + (F0 + F1 + 1) * C * 4 * 2)    # fused FC weights + bias
    vmem_limit = int(min(max(int(vmem_bytes * 1.5) + (2 << 20), 16 << 20), 48 << 20))

    out = pl.pallas_call(
        _model1_kernel,
        out_shape=jax.ShapeDtypeStruct((B_pad, C), jnp.float32),
        grid=grid,
        in_specs=[
            pl.BlockSpec((TB, MAXLEN * WIDTH), lambda i: (i, 0)),
            _resident_spec((MAXLEN * WIDTH, N_CONV)),
            _resident_spec((F0, C)),
            _resident_spec((F1, C)),
            _resident_spec((1, C)),
        ],
        out_specs=pl.BlockSpec((TB, C), lambda i: (i, 0)),
        compiler_params=pltpu.CompilerParams(
            dimension_semantics=("parallel",),
            vmem_limit_bytes=vmem_limit),
    )(x2d, W_unf, Wf0, Wf1, b_total)
    return out[:B]


# ------------------------------ parameters --------------------------------------
def init_params(key, fc_depth=FC_DEPTH):
    n_fc = max(fc_depth, 0)
    keys = jax.random.split(key, 2 * len(KERNELS) + 2 * n_fc + 2)
    ki = 0
    convs_torch, convs_kernel = [], []
    for (kh, kw), f in zip(KERNELS, FILTERS):
        fan_in = 1 * kh * kw
        bound = 1.0 / np.sqrt(fan_in)
        w = jax.random.uniform(keys[ki], (f, 1, kh, kw), jnp.float32, -bound, bound); ki += 1
        b = jax.random.uniform(keys[ki], (f,), jnp.float32, -bound, bound); ki += 1
        convs_torch.append((w, b))
        convs_kernel.append((w.reshape(f, kh * kw).T, b.reshape(1, f)))

    sumF = sum(FILTERS)
    C = TERMS_CLASSES
    fc_layers = []
    in_dim = sumF
    for _ in range(n_fc):
        bound = 1.0 / np.sqrt(in_dim)
        W = jax.random.uniform(keys[ki], (in_dim, C), jnp.float32, -bound, bound); ki += 1
        bb = jax.random.uniform(keys[ki], (1, C), jnp.float32, -bound, bound); ki += 1
        fc_layers.append((W, bb))
        in_dim = C
    bound = 1.0 / np.sqrt(in_dim)
    out_w = jax.random.uniform(keys[ki], (in_dim, C), jnp.float32, -bound, bound); ki += 1
    out_b = jax.random.uniform(keys[ki], (1, C), jnp.float32, -bound, bound); ki += 1

    return {"convs_torch": convs_torch, "convs_kernel": convs_kernel,
            "fc_layers": fc_layers, "out": (out_w, out_b)}


# ----------------------- pure-JAX reference (semantics check) --------------------
def reference_forward(x, params):
    B = x.shape[0]
    xin = x[:, None, :, :]                                  # NCHW (B,1,MAXLEN,W)
    nets = []
    for (w_t, b), (kh, kw) in zip(params["convs_torch"], KERNELS):
        conv = jax.lax.conv_general_dilated(
            xin, w_t, window_strides=(1, 1), padding="VALID",
            dimension_numbers=("NCHW", "OIHW", "NCHW"))     # (B, F, T, 1)
        conv = conv + b[None, :, None, None]
        pooled = jnp.max(conv, axis=2)                      # MaxPool2d((T,1)) -> (B, F, 1)
        nets.append(pooled.reshape(B, -1))                  # Flatten -> (B, F)
    net = jnp.concatenate(nets, axis=1)
    for W, bb in params["fc_layers"]:
        net = net @ W + bb
    out_w, out_b = params["out"]
    net = net @ out_w + out_b
    return jax.nn.sigmoid(net)


if __name__ == "__main__":
    key = jax.random.PRNGKey(0)
    pkey, xkey, xkey2 = jax.random.split(key, 3)
    params = init_params(pkey)

    # Small demo batch (spec-sized)
    x = jax.random.normal(xkey, (BATCH, MAXLEN, WIDTH), jnp.float32)
    ref = reference_forward(x, params)

    # Exact f32 path (matches PyTorch fp32 semantics) — tight tolerance.
    out_f32 = jax.block_until_ready(model1_forward(x, params, conv_bf16=False))
    assert out_f32.shape == (BATCH, TERMS_CLASSES)
    np.testing.assert_allclose(np.asarray(out_f32), np.asarray(ref), rtol=2e-5, atol=2e-5)

    # Default fast path: bf16 conv operands (f32 accumulate) — looser tolerance.
    out_fast = jax.block_until_ready(model1_forward(x, params))
    np.testing.assert_allclose(np.asarray(out_fast), np.asarray(ref), rtol=0, atol=3e-2)

    # Larger batch exercises the multi-tile "parallel" grid + partial last block.
    xb = jax.random.normal(xkey2, (600, MAXLEN, WIDTH), jnp.float32)
    refb = reference_forward(xb, params)
    outb_f32 = jax.block_until_ready(model1_forward(xb, params, conv_bf16=False))
    np.testing.assert_allclose(np.asarray(outb_f32), np.asarray(refb), rtol=2e-5, atol=2e-5)
    outb_fast = jax.block_until_ready(model1_forward(xb, params))
    np.testing.assert_allclose(np.asarray(outb_fast), np.asarray(refb), rtol=0, atol=3e-2)

    print("KERNEL_OK")
</pallas_src>

<mosaic_0001>
module attributes {stable_mosaic.version = 11 : i64} {
  func.func @_model1_kernel(%arg0: i32, %arg1: memref<8x128xf32, #tpu.memory_space<vmem>>, %arg2: memref<128x512xf32, #tpu.memory_space<vmem>>, %arg3: memref<16x32xf32, #tpu.memory_space<vmem>>, %arg4: memref<16x32xf32, #tpu.memory_space<vmem>>, %arg5: memref<1x32xf32, #tpu.memory_space<vmem>>, %arg6: memref<8x32xf32, #tpu.memory_space<vmem>>) attributes {dimension_semantics = [#tpu.dimension_semantics<parallel>], iteration_bounds = array<i64: 1>, scalar_prefetch = 0 : i64, scratch_operands = 0 : i64, tpu.core_type = #tpu.core_type<tc>, window_params = [{transform_indices = @transform_0, window_bounds = array<i64: 8, 128>}, {pipeline_mode = #tpu.pipeline_mode<synchronous>, transform_indices = @transform_1, window_bounds = array<i64: 128, 512>}, {pipeline_mode = #tpu.pipeline_mode<synchronous>, transform_indices = @transform_2, window_bounds = array<i64: 16, 32>}, {pipeline_mode = #tpu.pipeline_mode<synchronous>, transform_indices = @transform_3, window_bounds = array<i64: 16, 32>}, {pipeline_mode = #tpu.pipeline_mode<synchronous>, transform_indices = @transform_4, window_bounds = array<i64: 1, 32>}, {transform_indices = @transform_5, window_bounds = array<i64: 8, 32>}]} {
    %c0 = arith.constant 0 : index
    %c0_0 = arith.constant 0 : index
    %0 = vector.load %arg1[%c0, %c0_0] : memref<8x128xf32, #tpu.memory_space<vmem>>, vector<8x128xf32>
    %c0_1 = arith.constant 0 : index
    %c0_2 = arith.constant 0 : index
    %1 = vector.load %arg2[%c0_1, %c0_2] : memref<128x512xf32, #tpu.memory_space<vmem>>, vector<128x512xf32>
    %cst = arith.constant dense<0.000000e+00> : vector<8x512xf32>
    %2 = tpu.matmul %0, %1, %cst {dimension_numbers = #tpu.dot_dimension_numbers<[1], [0], [0], [1], [0, 0, 1, 1], [], []>} : vector<8x128xf32>, vector<128x512xf32>, vector<8x512xf32> -> vector<8x512xf32>
    %3 = vector.extract_strided_slice %2 {offsets = [0, 0], sizes = [8, 256], strides = [1, 1]} : vector<8x512xf32> to vector<8x256xf32>
    %4 = vector.extract_strided_slice %3 {offsets = [0, 0], sizes = [8, 128], strides = [1, 1]} : vector<8x256xf32> to vector<8x128xf32>
    %5 = vector.extract_strided_slice %3 {offsets = [0, 128], sizes = [8, 128], strides = [1, 1]} : vector<8x256xf32> to vector<8x128xf32>
    %6 = arith.maximumf %4, %5 : vector<8x128xf32>
    %7 = vector.extract_strided_slice %6 {offsets = [0, 0], sizes = [8, 64], strides = [1, 1]} : vector<8x128xf32> to vector<8x64xf32>
    %8 = vector.extract_strided_slice %6 {offsets = [0, 64], sizes = [8, 64], strides = [1, 1]} : vector<8x128xf32> to vector<8x64xf32>
    %9 = arith.maximumf %7, %8 : vector<8x64xf32>
    %10 = vector.extract_strided_slice %9 {offsets = [0, 0], sizes = [8, 32], strides = [1, 1]} : vector<8x64xf32> to vector<8x32xf32>
    %11 = vector.extract_strided_slice %9 {offsets = [0, 32], sizes = [8, 32], strides = [1, 1]} : vector<8x64xf32> to vector<8x32xf32>
    %12 = arith.maximumf %10, %11 : vector<8x32xf32>
    %13 = vector.extract_strided_slice %12 {offsets = [0, 0], sizes = [8, 16], strides = [1, 1]} : vector<8x32xf32> to vector<8x16xf32>
    %14 = vector.extract_strided_slice %12 {offsets = [0, 16], sizes = [8, 16], strides = [1, 1]} : vector<8x32xf32> to vector<8x16xf32>
    %15 = arith.maximumf %13, %14 : vector<8x16xf32>
    %16 = vector.extract_strided_slice %2 {offsets = [0, 256], sizes = [8, 256], strides = [1, 1]} : vector<8x512xf32> to vector<8x256xf32>
    %17 = vector.extract_strided_slice %16 {offsets = [0, 0], sizes = [8, 128], strides = [1, 1]} : vector<8x256xf32> to vector<8x128xf32>
    %18 = vector.extract_strided_slice %16 {offsets = [0, 128], sizes = [8, 128], strides = [1, 1]} : vector<8x256xf32> to vector<8x128xf32>
    %19 = arith.maximumf %17, %18 : vector<8x128xf32>
    %20 = vector.extract_strided_slice %19 {offsets = [0, 0], sizes = [8, 64], strides = [1, 1]} : vector<8x128xf32> to vector<8x64xf32>
    %21 = vector.extract_strided_slice %19 {offsets = [0, 64], sizes = [8, 64], strides = [1, 1]} : vector<8x128xf32> to vector<8x64xf32>
    %22 = arith.maximumf %20, %21 : vector<8x64xf32>
    %23 = vector.extract_strided_slice %22 {offsets = [0, 0], sizes = [8, 32], strides = [1, 1]} : vector<8x64xf32> to vector<8x32xf32>
    %24 = vector.extract_strided_slice %22 {offsets = [0, 32], sizes = [8, 32], strides = [1, 1]} : vector<8x64xf32> to vector<8x32xf32>
    %25 = arith.maximumf %23, %24 : vector<8x32xf32>
    %26 = vector.extract_strided_slice %25 {offsets = [0, 0], sizes = [8, 16], strides = [1, 1]} : vector<8x32xf32> to vector<8x16xf32>
    %27 = vector.extract_strided_slice %25 {offsets = [0, 16], sizes = [8, 16], strides = [1, 1]} : vector<8x32xf32> to vector<8x16xf32>
    %28 = arith.maximumf %26, %27 : vector<8x16xf32>
    %c0_3 = arith.constant 0 : index
    %c0_4 = arith.constant 0 : index
    %29 = vector.load %arg3[%c0_3, %c0_4] : memref<16x32xf32, #tpu.memory_space<vmem>>, vector<16x32xf32>
    %cst_5 = arith.constant dense<0.000000e+00> : vector<8x32xf32>
    %30 = tpu.matmul %15, %29, %cst_5 {dimension_numbers = #tpu.dot_dimension_numbers<[1], [0], [0], [1], [0, 0, 1, 1], [], []>} : vector<8x16xf32>, vector<16x32xf32>, vector<8x32xf32> -> vector<8x32xf32>
    %c0_6 = arith.constant 0 : index
    %c0_7 = arith.constant 0 : index
    %31 = vector.load %arg4[%c0_6, %c0_7] : memref<16x32xf32, #tpu.memory_space<vmem>>, vector<16x32xf32>
    %cst_8 = arith.constant dense<0.000000e+00> : vector<8x32xf32>
    %32 = tpu.matmul %28, %31, %cst_8 {dimension_numbers = #tpu.dot_dimension_numbers<[1], [0], [0], [1], [0, 0, 1, 1], [], []>} : vector<8x16xf32>, vector<16x32xf32>, vector<8x32xf32> -> vector<8x32xf32>
    %33 = arith.addf %30, %32 : vector<8x32xf32>
    %c0_9 = arith.constant 0 : index
    %c0_10 = arith.constant 0 : index
    %34 = vector.load %arg5[%c0_9, %c0_10] : memref<1x32xf32, #tpu.memory_space<vmem>>, vector<1x32xf32>
    %35 = vector.broadcast %34 : vector<1x32xf32> to vector<8x32xf32>
    %36 = arith.addf %33, %35 : vector<8x32xf32>
    %37 = arith.negf %36 : vector<8x32xf32>
    %38 = math.exp %37 : vector<8x32xf32>
    %cst_11 = arith.constant 1.000000e+00 : f32
    %39 = vector.broadcast %cst_11 : f32 to vector<8x32xf32>
    %40 = arith.addf %39, %38 : vector<8x32xf32>
    %41 = arith.divf %39, %40 : vector<8x32xf32>
    %c0_12 = arith.constant 0 : index
    %c0_13 = arith.constant 0 : index
    %42 = vector.load %arg6[%c0_12, %c0_13] : memref<8x32xf32, #tpu.memory_space<vmem>>, vector<8x32xf32>
    tpu.vector_store %arg6[%c0_12, %c0_13], %41 {strides = array<i32>} : memref<8x32xf32, #tpu.memory_space<vmem>>, vector<8x32xf32>,
    return
  }
  func.func @transform_0(%arg0: i32) -> (i32, i32) {
    %c0_i32 = arith.constant 0 : i32
    %c0_i32_0 = arith.constant 0 : i32
    return %arg0, %c0_i32 : i32, i32
  }
  func.func @transform_1(%arg0: i32) -> (i32, i32) {
    %c0_i32 = arith.constant 0 : i32
    %c0_i32_0 = arith.constant 0 : i32
    %c0_i32_1 = arith.constant 0 : i32
    return %c0_i32, %c0_i32_0 : i32, i32
  }
  func.func @transform_2(%arg0: i32) -> (i32, i32) {
    %c0_i32 = arith.constant 0 : i32
    %c0_i32_0 = arith.constant 0 : i32
    %c0_i32_1 = arith.constant 0 : i32
    return %c0_i32, %c0_i32_0 : i32, i32
  }
  func.func @transform_3(%arg0: i32) -> (i32, i32) {
    %c0_i32 = arith.constant 0 : i32
    %c0_i32_0 = arith.constant 0 : i32
    %c0_i32_1 = arith.constant 0 : i32
    return %c0_i32, %c0_i32_0 : i32, i32
  }
  func.func @transform_4(%arg0: i32) -> (i32, i32) {
    %c0_i32 = arith.constant 0 : i32
    %c0_i32_0 = arith.constant 0 : i32
    %c0_i32_1 = arith.constant 0 : i32
    return %c0_i32, %c0_i32_0 : i32, i32
  }
  func.func @transform_5(%arg0: i32) -> (i32, i32) {
    %c0_i32 = arith.constant 0 : i32
    %c0_i32_0 = arith.constant 0 : i32
    return %arg0, %c0_i32 : i32, i32
  }
}

</mosaic_0001>

<bundles_post_ra>
// kernel: model1_forward.1
= control target key start
LH: loop header
LB: loop body
LE: loop exit
PB: predicated region body
PF: predicated region fallthrough
CT: control target
= control target key end

     0   :  { %v463_v3 = vmov 0.0   ;;  %s465_s24 = smov 96   ;;  %vm466_vm0 = vmmov 0   ;;  %vm263_vm1 = vcmask 130048   ;;  %vm424_vm2 = vcmask 261120   ;;  %s719_s1 = inlined_call_operand.vmem [shape: f32[128,512], index: 1, kind: input, shape index: {}]   ;;  %s720_s0 = inlined_call_operand.vmem [shape: f32[8,128], index: 0, kind: input, shape index: {}]   ;;  %s721_s2 = inlined_call_operand.vmem [shape: f32[16,32], index: 2, kind: input, shape index: {}]   ;;  %s722_s3 = inlined_call_operand.vmem [shape: f32[16,32], index: 3, kind: input, shape index: {}]   ;;  %s723_s4 = inlined_call_operand.vmem [shape: f32[1,32], index: 4, kind: input, shape index: {}]   ;;  %s724_s5 = inlined_call_operand.vmem [shape: f32[8,32], index: 5, kind: output, shape index: {}]  }
   0x1   :  { %v82_v0 = vld [vmem:[%s719_s1 + $0x1e8] sm:$0xff]  ;;  %v81_v1 = vld [vmem:[%s719_s1 + $0x1e0] sm:$0xff]  ;;  %149 = vmatprep.mubr.f32.mxu0 %v463_v3  ;;  %220 = vmatprep.mubr.f32.mxu1 %v463_v3  ;;  %v84_v4 = vld [vmem:[%s719_s1 + $0x1f8] sm:$0xff] }
   0x2   :  { %v78_v2 = vld [vmem:[%s719_s1 + $0x1c8] sm:$0xff]  ;;  %85 = vmatprep.subr.mxu0 %v82_v0  ;;  %v77_v5 = vld [vmem:[%s719_s1 + $0x1c0] sm:$0xff]  ;;  %v83_v6 = vld [vmem:[%s719_s1 + $0x1f0] sm:$0xff]  ;;  %156 = vmatprep.subr.mxu1 %v84_v4 }
   0x3   :  { %86 = vmatpush1.msra.mxu0 %v81_v1  ;;  %v74_v7 = vld [vmem:[%s719_s1 + $0x1a8] sm:$0xff]  ;;  %v80_v8 = vld [vmem:[%s719_s1 + $0x1d8] sm:$0xff]  ;;  %157 = vmatpush1.msra.mxu1 %v83_v6  ;;  %v73_v9 = vld [vmem:[%s719_s1 + $0x1a0] sm:$0xff] }
   0x4   :  { %87 = vmatprep.subr.mxu0 %v78_v2  ;;  %v79_v10 = vld [vmem:[%s719_s1 + $0x1d0] sm:$0xff]  ;;  %v76_v11 = vld [vmem:[%s719_s1 + $0x1b8] sm:$0xff]  ;;  %158 = vmatprep.subr.mxu1 %v80_v8  ;;  %v70_v12 = vld [vmem:[%s719_s1 + $0x188] sm:$0xff] }
   0x5   :  { %88 = vmatpush1.msra.mxu0 %v77_v5  ;;  %v75_v13 = vld [vmem:[%s719_s1 + $0x1b0] sm:$0xff]  ;;  %159 = vmatpush1.msra.mxu1 %v79_v10  ;;  %v69_v14 = vld [vmem:[%s719_s1 + $0x180] sm:$0xff]  ;;  %v72_v15 = vld [vmem:[%s719_s1 + $0x198] sm:$0xff] }
   0x6   :  { %89 = vmatprep.subr.mxu0 %v74_v7  ;;  %160 = vmatprep.subr.mxu1 %v76_v11  ;;  %v66_v16 = vld [vmem:[%s719_s1 + $0x168] sm:$0xff]  ;;  %v71_v17 = vld [vmem:[%s719_s1 + $0x190] sm:$0xff]  ;;  %v65_v18 = vld [vmem:[%s719_s1 + $0x160] sm:$0xff] }
   0x7   :  { %90 = vmatpush1.msra.mxu0 %v73_v9  ;;  %161 = vmatpush1.msra.mxu1 %v75_v13  ;;  %v68_v19 = vld [vmem:[%s719_s1 + $0x178] sm:$0xff]  ;;  %v62_v20 = vld [vmem:[%s719_s1 + $0x148] sm:$0xff]  ;;  %v67_v21 = vld [vmem:[%s719_s1 + $0x170] sm:$0xff] }
   0x8   :  { %91 = vmatprep.subr.mxu0 %v70_v12  ;;  %162 = vmatprep.subr.mxu1 %v72_v15  ;;  %v61_v22 = vld [vmem:[%s719_s1 + $0x140] sm:$0xff]  ;;  %v64_v23 = vld [vmem:[%s719_s1 + $0x158] sm:$0xff]  ;;  %v58_v24 = vld [vmem:[%s719_s1 + $0x128] sm:$0xff] }
   0x9   :  { %92 = vmatpush1.msra.mxu0 %v69_v14  ;;  %163 = vmatpush1.msra.mxu1 %v71_v17  ;;  %v63_v25 = vld [vmem:[%s719_s1 + $0x150] sm:$0xff]  ;;  %v57_v26 = vld [vmem:[%s719_s1 + $0x120] sm:$0xff]  ;;  %v60_v27 = vld [vmem:[%s719_s1 + $0x138] sm:$0xff] }
   0xa   :  { %93 = vmatprep.subr.mxu0 %v66_v16  ;;  %164 = vmatprep.subr.mxu1 %v68_v19  ;;  %v54_v28 = vld [vmem:[%s719_s1 + $0x108] sm:$0xff]  ;;  %v59_v29 = vld [vmem:[%s719_s1 + $0x130] sm:$0xff]  ;;  %v53_v30 = vld [vmem:[%s719_s1 + $0x100] sm:$0xff] }
   0xb   :  { %94 = vmatpush1.msra.mxu0 %v65_v18  ;;  %165 = vmatpush1.msra.mxu1 %v67_v21  ;;  %v56_v31 = vld [vmem:[%s719_s1 + $0x118] sm:$0xff]  ;;  %v50_v32 = vld [vmem:[%s719_s1 + $0xe8] sm:$0xff]  ;;  %v55_v33 = vld [vmem:[%s719_s1 + $0x110] sm:$0xff] }
   0xc   :  { %95 = vmatprep.subr.mxu0 %v62_v20  ;;  %166 = vmatprep.subr.mxu1 %v64_v23  ;;  %v49_v34 = vld [vmem:[%s719_s1 + $0xe0] sm:$0xff]  ;;  %v52_v35 = vld [vmem:[%s719_s1 + $0xf8] sm:$0xff]  ;;  %v46_v36 = vld [vmem:[%s719_s1 + $0xc8] sm:$0xff] }
   0xd   :  { %96 = vmatpush1.msra.mxu0 %v61_v22  ;;  %167 = vmatpush1.msra.mxu1 %v63_v25  ;;  %v51_v37 = vld [vmem:[%s719_s1 + $0xf0] sm:$0xff]  ;;  %v45_v38 = vld [vmem:[%s719_s1 + $0xc0] sm:$0xff]  ;;  %v48_v39 = vld [vmem:[%s719_s1 + $0xd8] sm:$0xff] }
   0xe   :  { %97 = vmatprep.subr.mxu0 %v58_v24  ;;  %168 = vmatprep.subr.mxu1 %v60_v27  ;;  %v42_v40 = vld [vmem:[%s719_s1 + $0xa8] sm:$0xff]  ;;  %v47_v41 = vld [vmem:[%s719_s1 + $0xd0] sm:$0xff]  ;;  %v41_v42 = vld [vmem:[%s719_s1 + $0xa0] sm:$0xff] }
   0xf   :  { %98 = vmatpush1.msra.mxu0 %v57_v26  ;;  %169 = vmatpush1.msra.mxu1 %v59_v29  ;;  %v44_v43 = vld [vmem:[%s719_s1 + $0xb8] sm:$0xff]  ;;  %v38_v44 = vld [vmem:[%s719_s1 + $0x88] sm:$0xff]  ;;  %v43_v45 = vld [vmem:[%s719_s1 + $0xb0] sm:$0xff] }
  0x10   :  { %99 = vmatprep.subr.mxu0 %v54_v28  ;;  %170 = vmatprep.subr.mxu1 %v56_v31  ;;  %v37_v46 = vld [vmem:[%s719_s1 + $0x80] sm:$0xff]  ;;  %v40_v47 = vld [vmem:[%s719_s1 + $0x98] sm:$0xff]  ;;  %v34_v48 = vld [vmem:[%s719_s1 + $0x68] sm:$0xff] }
  0x11   :  { %100 = vmatpush1.msra.mxu0 %v53_v30  ;;  %171 = vmatpush1.msra.mxu1 %v55_v33  ;;  %v39_v49 = vld [vmem:[%s719_s1 + $0x90] sm:$0xff]  ;;  %v33_v50 = vld [vmem:[%s719_s1 + $0x60] sm:$0xff]  ;;  %v36_v51 = vld [vmem:[%s719_s1 + $0x78] sm:$0xff] }
  0x12   :  { %101 = vmatprep.subr.mxu0 %v50_v32  ;;  %172 = vmatprep.subr.mxu1 %v52_v35  ;;  %v30_v52 = vld [vmem:[%s719_s1 + $0x48] sm:$0xff]  ;;  %v35_v53 = vld [vmem:[%s719_s1 + $0x70] sm:$0xff]  ;;  %v29_v54 = vld [vmem:[%s719_s1 + $0x40] sm:$0xff] }
  0x13   :  { %102 = vmatpush1.msra.mxu0 %v49_v34  ;;  %173 = vmatpush1.msra.mxu1 %v51_v37  ;;  %v32_v55 = vld [vmem:[%s719_s1 + $0x58] sm:$0xff]  ;;  %v26_v56 = vld [vmem:[%s719_s1 + $0x28] sm:$0xff]  ;;  %v31_v57 = vld [vmem:[%s719_s1 + $0x50] sm:$0xff] }
  0x14   :  { %103 = vmatprep.subr.mxu0 %v46_v36  ;;  %174 = vmatprep.subr.mxu1 %v48_v39  ;;  %v25_v58 = vld [vmem:[%s719_s1 + $0x20] sm:$0xff]  ;;  %v28_v59 = vld [vmem:[%s719_s1 + $0x38] sm:$0xff]  ;;  %v22_v60 = vld [vmem:[%s719_s1 + $0x8] sm:$0xff] }
  0x15   :  { %104 = vmatpush1.msra.mxu0 %v45_v38  ;;  %175 = vmatpush1.msra.mxu1 %v47_v41  ;;  %v27_v61 = vld [vmem:[%s719_s1 + $0x30] sm:$0xff]  ;;  %v21_v62 = vld [vmem:[%s719_s1] sm:$0xff]  ;;  %v24_v63 = vld [vmem:[%s719_s1 + $0x18] sm:$0xff] }
  0x16   :  { %105 = vmatprep.subr.mxu0 %v42_v40  ;;  %176 = vmatprep.subr.mxu1 %v44_v43  ;;  %v20_v0 = vld [vmem:[%s720_s0] sm:$0xff]  ;;  %v23_v1 = vld [vmem:[%s719_s1 + $0x10] sm:$0xff]  ;;  %s464_s0 = smov 64   ;;  %v260_v9 = vld [vmem:[%s721_s2 + $0x8] sm:$0xff] }
  0x17   :  { %106 = vmatpush1.msra.mxu0 %v41_v42  ;;  %177 = vmatpush1.msra.mxu1 %v43_v45  ;;  %v259_v14 = vld [vmem:[%s721_s2] sm:$0xff]  ;;  %v262_v15 = vld [vmem:[%s722_s3 + $0x8] sm:$0xff]  ;;  %s467_s2 = smov 112  }
  0x18   :  { %107 = vmatprep.subr.mxu0 %v38_v44  ;;  %178 = vmatprep.subr.mxu1 %v40_v47  ;;  %v261_v16 = vld [vmem:[%s722_s3] sm:$0xff] }
  0x19   :  { %108 = vmatpush1.msra.mxu0 %v37_v46  ;;  %179 = vmatpush1.msra.mxu1 %v39_v49  ;;  %v432_v27 = vld [vmem:[%s723_s4] ss:$0 sm:$0xff] }
  0x1a   :  { %109 = vmatprep.subr.mxu0 %v34_v48  ;;  %180 = vmatprep.subr.mxu1 %v36_v51 }
  0x1b   :  { %110 = vmatpush1.msra.mxu0 %v33_v50  ;;  %181 = vmatpush1.msra.mxu1 %v35_v53 }
  0x1c   :  { %111 = vmatprep.subr.mxu0 %v30_v52  ;;  %182 = vmatprep.subr.mxu1 %v32_v55 }
  0x1d   :  { %112 = vmatpush1.msra.mxu0 %v29_v54  ;;  %183 = vmatpush1.msra.mxu1 %v31_v57 }
  0x1e   :  { %113 = vmatprep.subr.mxu0 %v26_v56  ;;  %184 = vmatprep.subr.mxu1 %v28_v59 }
  0x1f   :  { %114 = vmatpush1.msra.mxu0 %v25_v58  ;;  %185 = vmatpush1.msra.mxu1 %v27_v61 }
  0x20   :  { %115 = vmatprep.subr.mxu0 %v22_v60  ;;  %186 = vmatprep.subr.mxu1 %v24_v63 }
  0x21   :  { %116 = vmatpush1.msra.mxu0 %v21_v62  ;;  %187 = vmatpush1.msra.mxu1 %v23_v1 }
  0x22   :  { %150 = vmatmul.mubr.f32.vlgmr.msra.gmra.mxu0 %v20_v0  ;;  %221 = vmatmul.mubr.f32.vlgmr.msra.gmra.mxu1 %v20_v0 }
  0x23   :  { %447 = vmatprep.subr.mxu1 %v463_v3  ;;  %440 = vmatprep.subr.mxu0 %v463_v3 }
  0x24   :  { %448 = vmatpush3.msra.mxu1 %v260_v9  ;;  %451 = vmatprep.mubr.msk.f32.mxu1 %vm466_vm0, %v463_v3 }
  0x25   :  { %449 = vmatprep.subr.mxu1 %v463_v3  ;;  %441 = vmatpush3.msra.mxu0 %v262_v15 }
  0x26   :  { %450 = vmatpush3.msra.mxu1 %v259_v14  ;;  %444 = vmatprep.mubr.msk.f32.mxu0 %vm466_vm0, %v463_v3 }
  0x27   :  { %442 = vmatprep.subr.mxu0 %v463_v3 }
  0x28   :  { %443 = vmatpush3.msra.mxu0 %v261_v16 }
  0xe2   :  { %v151_v2 = vpop.f32.mrf.mxu0  ;;  %v222_v4 = vpop.f32.mrf.mxu1 }
  0xe4   :  { %v153_v5 = vpop.f32.mrf.mxu0  ;;  %v224_v7 = vpop.f32.mrf.mxu1 }
  0xe5   :  { %v227_v6 = vmax.f32 %v151_v2, %v153_v5  ;;  %v243_v8 = vmax.f32 %v222_v4, %v224_v7 }
  0xe7   :  { %229 = vrot.lane.b32.xlu0 %v227_v6, %s464_s0 }
  0xeb   :  { %245 = vrot.lane.b32.xlu0 %v243_v8, %s464_s0 }
 0x159   :  { %v230_v10 = vpop.permute.xlu0 %229 }
 0x15a   :  { %v232_v11 = vmax.f32 %v227_v6, %v230_v10 }
 0x15c   :  { %234 = vrot.lane.b32.xlu1 %v232_v11, %s465_s24 }
 0x15d   :  { %v246_v12 = vpop.permute.xlu0 %245 }
 0x15e   :  { %v248_v13 = vmax.f32 %v243_v8, %v246_v12 }
 0x160   :  { %250 = vrot.lane.b32.xlu1 %v248_v13, %s465_s24 }
 0x1ce   :  { %v235_v17 = vpop.permute.xlu1 %234 }
 0x1cf   :  { %v237_v18 = vmax.f32 %v232_v11, %v235_v17 }
 0x1d1   :  { %239 = vrot.lane.b32.xlu0 %v237_v18, %s467_s2 }
 0x1d2   :  { %v251_v19 = vpop.permute.xlu1 %250 }
 0x1d3   :  { %v253_v20 = vmax.f32 %v248_v13, %v251_v19 }
 0x1d5   :  { %255 = vrot.lane.b32.xlu1 %v253_v20, %s467_s2 }
 0x243   :  { %v240_v21 = vpop.permute.xlu0 %239 }
 0x244   :  { %v242_v22 = vmax.f32 %v237_v18, %v240_v21 }
 0x246   :  { %452 = vmatmul.mubr.msk.f32.vlgmr.msra.gmra.mxu1 %vm263_vm1, %v242_v22 }
 0x247   :  { %v256_v23 = vpop.permute.xlu1 %255 }
 0x248   :  { %v258_v24 = vmax.f32 %v253_v20, %v256_v23 }
 0x24a   :  { %445 = vmatmul.mubr.msk.f32.vlgmr.msra.gmra.mxu0 %vm263_vm1, %v258_v24 }
 0x306   :  { %v406_v3 = vpop.f32.mrf.mxu1 }
 0x308   :  { %v453_v25 = vpop.f32.mrf.mxu1 }
 0x30a   :  { %v333_v26 = vpop.f32.mrf.mxu0 }
 0x30b   :  { %v407_v28 = vadd.f32 %v406_v3, %v333_v26 }
 0x30c   :  { %v446_v29 = vpop.f32.mrf.mxu0 }
 0x30d   :  { %v417_v30 = vadd.f32 %v432_v27, %v407_v28 }
 0x30f   :  { %v433_v31 = vmul.f32 -1.442695, %v417_v30 }
 0x311   :  { %459 = vpow2.f32 %v433_v31 }
 0x31e   :  { %v460_v32 = vpop.eup %459 }
 0x31f   :  { %v421_v33 = vadd.f32 1.0, %v460_v32 }
 0x321   :  { %461 = vrcp.f32 %v421_v33 }
 0x32e   :  { %v462_v34 = vpop.eup %461 }
 0x32f   :  { %425 = vst.msk [vmem:[%s724_s5] sm:$0xff] %vm424_vm2, %v462_v34 }

</bundles_post_ra>
